<compile_context>
chip_gen: v7x
topology: tpu7x:2x2x1
jax: 0.10.0
libtpu: 0.0.40
codegen_flags: <defaults>
</compile_context>

<pallas_src>
import functools

import jax
import jax.numpy as jnp
from jax.experimental import pallas as pl
from jax.experimental.pallas import tpu as pltpu

_BN_EPS = 1e-5
_LANE = 128            # hidden channel dims padded to a multiple of this (lane-dense)
_SUBLANE = 16          # bf16 sublane packing -> row tiles are multiples of 16
_MIN_TILE_M = 16
_DEFAULT_TILE_M = 1024  # matmul+stats phase (HBM-bound: big tiles -> ~85%+ of roofline)
_NORM_TILE_CAP = 2048   # norm phase holds no weights -> larger row tiles fit easily


def _round_up(x, m):
    return (x + m - 1) // m * m


def _vmem_capacity_bytes():
    """Physical per-TensorCore VMEM; conservative 64 MiB (v7x) fallback."""
    try:
        return int(pltpu.get_tpu_info().vmem_capacity_bytes)
    except Exception:
        return 64 * 1024 * 1024


def _matmul_footprint(tm, c_in, c_out):
    """Approx VMEM bytes for one matmul+stats step (all inputs double-buffered)."""
    a_bytes = 2 * tm * c_in * 2          # activation tile, bf16, double-buffered
    y_bytes = 2 * tm * c_out * 2         # pre-BN output tile, bf16, double-buffered
    w_bytes = 2 * c_in * c_out * 2       # weights, bf16 (conservatively double-buffered)
    misc = 4 * c_in * 4 + 4 * 8 * c_out * 4   # scale/offset + stat accumulators
    return a_bytes + y_bytes + w_bytes + misc


def _norm_footprint(rows, c_in, c_out):
    return 2 * rows * c_in * 2 + 2 * rows * c_out * 4 + 4 * c_in * 4


# --------------------------------------------------------------------------------------
# Kernels
# --------------------------------------------------------------------------------------
def _matmul_stats_kernel(scale_ref, offset_ref, a_ref, w_ref,
                         y_ref, ysum_ref, ysq_ref,
                         *, apply_act, mask_rows, m_true, tile_m, tiles_per_chunk):
    """One M-tile of: [normalize+ReLU of previous layer] -> matmul -> BN-stat accumulation.

    Grid = (chunk ("parallel", v7x megacore split), tile-within-chunk ("arbitrary")).
    Each chunk owns its own (8, Cout) accumulator block; row 0 carries the partial sums.
    """
    i = pl.program_id(1)                              # tile index inside this chunk

    # Zero this chunk's resident per-channel accumulators on its first tile.
    @pl.when(i == 0)
    def _init():
        ysum_ref[...] = jnp.zeros_like(ysum_ref)
        ysq_ref[...] = jnp.zeros_like(ysq_ref)

    a = a_ref[...]                                    # (tile_m, Cin) bf16
    if apply_act:
        # Previous layer's BatchNorm folded into a per-channel scale/offset + ReLU.
        a32 = a.astype(jnp.float32) * scale_ref[...] + offset_ref[...]
        a = jnp.maximum(a32, 0.0).astype(jnp.bfloat16)

    # Pointwise Conv1d == channel matmul on the MXU (f32 accumulation).
    y = jnp.dot(a, w_ref[...], preferred_element_type=jnp.float32)   # (tile_m, Cout) f32

    # Mask rows that only exist because M was padded up to the tile grid, so they do
    # not pollute BatchNorm statistics (statically dropped when M divides evenly).
    if mask_rows:
        c = pl.program_id(0)
        row = ((c * tiles_per_chunk + i) * tile_m
               + jax.lax.broadcasted_iota(jnp.int32, (tile_m, 1), 0))
        y_stats = jnp.where(row < m_true, y, 0.0)
    else:
        y_stats = y

    ysum_ref[0:1, :] += jnp.sum(y_stats, axis=0, keepdims=True)
    ysq_ref[0:1, :] += jnp.sum(y_stats * y_stats, axis=0, keepdims=True)

    y_ref[...] = y.astype(y_ref.dtype)                # pre-BN activation, bf16 to HBM


def _norm_act_kernel(scale_ref, offset_ref, y_ref, o_ref):
    """Final layer's folded BatchNorm + ReLU; stores only the unpadded channels."""
    y = y_ref[...].astype(jnp.float32)                           # (rows, C_last_padded)
    z = jnp.maximum(y * scale_ref[...] + offset_ref[...], 0.0)
    o_ref[...] = z[:, :o_ref.shape[1]].astype(o_ref.dtype)       # narrow channel write


# --------------------------------------------------------------------------------------
# Per-phase pallas_call wrappers
# --------------------------------------------------------------------------------------
def _matmul_stats_phase(scale, offset, a, w, *, apply_act, m_true, tile_m,
                        num_chunks, tiles_per_chunk, vmem_limit):
    m_pad, c_in = a.shape
    c_out = w.shape[1]
    mask_rows = (m_pad != m_true)

    kernel = functools.partial(
        _matmul_stats_kernel, apply_act=apply_act, mask_rows=mask_rows,
        m_true=m_true, tile_m=tile_m, tiles_per_chunk=tiles_per_chunk)

    t = tiles_per_chunk
    row_map = lambda c, i, t=t: (c * t + i, 0)
    const_map = lambda c, i: (0, 0)
    acc_map = lambda c, i: (c, 0)

    return pl.pallas_call(
        kernel,
        out_shape=(
            jax.ShapeDtypeStruct((m_pad, c_out), jnp.bfloat16),        # pre-BN activation
            jax.ShapeDtypeStruct((num_chunks * 8, c_out), jnp.float32),  # per-chunk sums
            jax.ShapeDtypeStruct((num_chunks * 8, c_out), jnp.float32),  # per-chunk sumsq
        ),
        grid=(num_chunks, tiles_per_chunk),
        in_specs=[
            pl.BlockSpec((1, c_in), const_map),            # prev-layer folded BN scale
            pl.BlockSpec((1, c_in), const_map),            # prev-layer folded BN offset
            pl.BlockSpec((tile_m, c_in), row_map),         # activation tile
            pl.BlockSpec((c_in, c_out), const_map),        # weights (VMEM-resident)
        ],
        out_specs=(
            pl.BlockSpec((tile_m, c_out), row_map),
            pl.BlockSpec((8, c_out), acc_map),             # resident per-chunk accumulator
            pl.BlockSpec((8, c_out), acc_map),             # resident per-chunk accumulator
        ),
        compiler_params=pltpu.CompilerParams(
            dimension_semantics=("parallel", "arbitrary"),  # chunks -> 2 TCs on v7x
            vmem_limit_bytes=vmem_limit,
        ),
    )(scale, offset, a, w)


def _norm_act_phase(scale, offset, y, *, c_out, tile_rows, vmem_limit):
    m_pad, c_in = y.shape
    return pl.pallas_call(
        _norm_act_kernel,
        out_shape=jax.ShapeDtypeStruct((m_pad, c_out), jnp.float32),   # unpadded channels
        grid=(m_pad // tile_rows,),
        in_specs=[
            pl.BlockSpec((1, c_in), lambda i: (0, 0)),
            pl.BlockSpec((1, c_in), lambda i: (0, 0)),
            pl.BlockSpec((tile_rows, c_in), lambda i: (i, 0)),
        ],
        out_specs=pl.BlockSpec((tile_rows, c_out), lambda i: (i, 0)),
        compiler_params=pltpu.CompilerParams(
            dimension_semantics=("parallel",),             # independent tiles
            vmem_limit_bytes=vmem_limit,
        ),
    )(scale, offset, y)


# --------------------------------------------------------------------------------------
# Parameters
# --------------------------------------------------------------------------------------
def init_mlp_conv1d_params(layers, key):
    """Synthetic params matching nn.Conv1d(cin, cout, 1) + nn.BatchNorm1d(cout) defaults.

    Conv1d bias is omitted: a per-channel constant added before training-mode BatchNorm
    is exactly cancelled by the mean subtraction, so it does not affect the forward.
    """
    params = []
    for cin, cout in zip(layers[:-1], layers[1:]):
        key, kw = jax.random.split(key)
        bound = 1.0 / float(cin) ** 0.5
        w = jax.random.uniform(kw, (cin, cout), jnp.float32, -bound, bound)
        gamma = jnp.ones((cout,), jnp.float32)    # BatchNorm weight init
        beta = jnp.zeros((cout,), jnp.float32)    # BatchNorm bias init
        params.append((w, gamma, beta))
    return params


def pad_mlp_conv1d_params(params):
    """Pad channel dims to multiples of 128 (lane-dense).

    The first layer's input (Cin) is left UNPADDED so the raw x can be streamed
    directly.  gamma is padded with zeros so padded channels get scale 0 and stay
    exactly zero through every subsequent layer.
    """
    padded = []
    for idx, (w, gamma, beta) in enumerate(params):
        cin, cout = w.shape
        cin_p = cin if idx == 0 else _round_up(cin, _LANE)
        cout_p = _round_up(cout, _LANE)
        w_p = jnp.zeros((cin_p, cout_p), jnp.bfloat16).at[:cin, :cout].set(
            w.astype(jnp.bfloat16))
        g_p = jnp.zeros((1, cout_p), jnp.float32).at[0, :cout].set(gamma)
        b_p = jnp.zeros((1, cout_p), jnp.float32).at[0, :cout].set(beta)
        padded.append((w_p, g_p, b_p))
    return tuple(padded)


# --------------------------------------------------------------------------------------
# Forward
# --------------------------------------------------------------------------------------
def make_mlp_conv1d_forward(layers, *, tile_m=None):
    """Returns a jitted forward: x (B, N, layers[0]) f32 -> (B, N, layers[-1]) f32."""
    c_last = layers[-1]
    # Per-layer channel dims as seen by the kernels (first input unpadded, rest padded).
    c_dims = [layers[0]] + [_round_up(c, _LANE) for c in layers[1:]]

    vmem_cap = _vmem_capacity_bytes()
    budget = (vmem_cap * 3) // 4            # 48 MiB on v7x, 96 MiB on v5e/v6e

    def _max_matmul_fp(tm):
        return max(_matmul_footprint(tm, ci, co)
                   for ci, co in zip(c_dims[:-1], c_dims[1:]))

    @jax.jit
    def forward(x, padded_params):
        b, n, c0 = x.shape
        m = b * n

        # ----- static tiling decisions (shapes are trace-time Python ints) -----------
        tm = _DEFAULT_TILE_M if tile_m is None else tile_m
        tm = max(_MIN_TILE_M, _round_up(min(tm, _round_up(m, _SUBLANE)), _SUBLANE))
        while tm > _MIN_TILE_M and _max_matmul_fp(tm) > budget:   # fit generation VMEM
            tm = max(_MIN_TILE_M, _round_up(tm // 2, _SUBLANE))

        # v7x megacore split of the M axis into per-core chunks (no-op on v5e/v6e).
        num_chunks = 2 if _round_up(m, tm) // tm >= 2 else 1
        m_pad = _round_up(m, num_chunks * tm)
        tiles_total = m_pad // tm
        tiles_per_chunk = tiles_total // num_chunks

        # Norm phase: biggest row tile that divides m_pad, capped by _NORM_TILE_CAP/budget.
        k_norm = 1
        k_max = max(1, min(tiles_total, _NORM_TILE_CAP // tm))
        for k in range(k_max, 0, -1):
            if (tiles_total % k == 0
                    and _norm_footprint(k * tm, c_dims[-1], c_last) <= budget):
                k_norm = k
                break
        tile_norm = k_norm * tm

        fp = max(_max_matmul_fp(tm), _norm_footprint(tile_norm, c_dims[-1], c_last))
        vmem_limit = int(max(32 << 20, min(vmem_cap - (4 << 20), fp + (8 << 20))))

        # ----- input: flatten to (M, C0) bf16; pad rows only (channels stay unpadded) -
        x2 = x.reshape(m, c0).astype(jnp.bfloat16)
        if m_pad != m:
            h = jnp.zeros((m_pad, c0), jnp.bfloat16).at[:m, :].set(x2)
        else:
            h = x2

        # Dummy (unused) scale/offset for the first phase (apply_act=False).
        scale = jnp.ones((1, c0), jnp.float32)
        offset = jnp.zeros((1, c0), jnp.float32)

        for k, (w_p, g_p, b_p) in enumerate(padded_params):
            y, ysum, ysq = _matmul_stats_phase(
                scale, offset, h, w_p, apply_act=(k > 0), m_true=m, tile_m=tm,
                num_chunks=num_chunks, tiles_per_chunk=tiles_per_chunk,
                vmem_limit=vmem_limit)
            # Combine the per-chunk partial sums and fold this layer's BatchNorm into a
            # per-channel scale/offset (tiny f32 work between the gridded passes).
            s1 = jnp.sum(ysum, axis=0, keepdims=True)
            s2 = jnp.sum(ysq, axis=0, keepdims=True)
            mean = s1 / m
            var = jnp.maximum(s2 / m - mean * mean, 0.0)   # clamp single-pass variance
            inv_std = jax.lax.rsqrt(var + _BN_EPS)
            scale = g_p * inv_std
            offset = b_p - mean * scale
            h = y

        out = _norm_act_phase(scale, offset, h, c_out=c_last,
                              tile_rows=tile_norm, vmem_limit=vmem_limit)
        if m_pad != m:
            out = out[:m]
        return out.reshape(b, n, c_last)

    return forward


def _reference_forward(x, params, eps):
    """Pure-JAX f32 reference of the PyTorch forward (training-mode BN, biased variance)."""
    b, n, _ = x.shape
    h = x.reshape(b * n, -1)
    for w, gamma, beta in params:
        y = h @ w
        mean = jnp.mean(y, axis=0)
        var = jnp.mean((y - mean) ** 2, axis=0)
        h = jnp.maximum((y - mean) * jax.lax.rsqrt(var + eps) * gamma + beta, 0.0)
    return h.reshape(b, n, -1)


if __name__ == "__main__":
    key = jax.random.PRNGKey(0)
    kx, kp = jax.random.split(key)

    layers = [4, 32, 16]          # Cin=4 -> hidden 32 -> Cout=16
    B, N = 2, 24                  # M = 48: pads to 64 -> exercises padded-row masking
    x = jax.random.normal(kx, (B, N, layers[0]), jnp.float32)

    params = init_mlp_conv1d_params(layers, kp)
    padded_params = pad_mlp_conv1d_params(params)

    # tile_m=16 -> m_pad=64, grid (2 chunks x 2 tiles): exercises the "parallel" chunk
    # axis, cross-tile stat accumulation, row masking, and the narrow final write.
    forward = make_mlp_conv1d_forward(layers, tile_m=16)
    out = forward(x, padded_params)
    jax.block_until_ready(out)

    assert out.shape == (B, N, layers[-1])

    ref = _reference_forward(x, params, _BN_EPS)
    max_err = float(jnp.max(jnp.abs(out - ref)))
    assert max_err < 0.15, f"max abs error vs f32 reference too large: {max_err}"

    print("KERNEL_OK")
</pallas_src>

<mosaic_0001>
module attributes {stable_mosaic.version = 11 : i64} {
  func.func @_matmul_stats_kernel(%arg0: i32, %arg1: i32, %arg2: memref<1x4xf32, #tpu.memory_space<vmem>>, %arg3: memref<1x4xf32, #tpu.memory_space<vmem>>, %arg4: memref<16x4xbf16, #tpu.memory_space<vmem>>, %arg5: memref<4x128xbf16, #tpu.memory_space<vmem>>, %arg6: memref<16x128xbf16, #tpu.memory_space<vmem>>, %arg7: memref<8x128xf32, #tpu.memory_space<vmem>>, %arg8: memref<8x128xf32, #tpu.memory_space<vmem>>) attributes {dimension_semantics = [#tpu.dimension_semantics<parallel>, #tpu.dimension_semantics<arbitrary>], iteration_bounds = array<i64: 2, 2>, scalar_prefetch = 0 : i64, scratch_operands = 0 : i64, tpu.core_type = #tpu.core_type<tc>, window_params = [{pipeline_mode = #tpu.pipeline_mode<synchronous>, transform_indices = @transform_0, window_bounds = array<i64: 1, 4>}, {pipeline_mode = #tpu.pipeline_mode<synchronous>, transform_indices = @transform_1, window_bounds = array<i64: 1, 4>}, {transform_indices = @transform_2, window_bounds = array<i64: 16, 4>}, {pipeline_mode = #tpu.pipeline_mode<synchronous>, transform_indices = @transform_3, window_bounds = array<i64: 4, 128>}, {transform_indices = @transform_4, window_bounds = array<i64: 16, 128>}, {transform_indices = @transform_5, window_bounds = array<i64: 8, 128>}, {transform_indices = @transform_6, window_bounds = array<i64: 8, 128>}]} {
    %c0_i32 = arith.constant 0 : i32
    %0 = arith.cmpi eq, %arg1, %c0_i32 : i32
    %1 = arith.extui %0 : i1 to i32
    %c0_i32_0 = arith.constant 0 : i32
    %2 = arith.cmpi ne, %1, %c0_i32_0 : i32
    scf.if %2 {
      %cst_17 = arith.constant 0.000000e+00 : f32
      %31 = vector.broadcast %cst_17 : f32 to vector<8x128xf32>
      %c0_18 = arith.constant 0 : index
      %c0_19 = arith.constant 0 : index
      %32 = vector.load %arg7[%c0_18, %c0_19] : memref<8x128xf32, #tpu.memory_space<vmem>>, vector<8x128xf32>
      tpu.vector_store %arg7[%c0_18, %c0_19], %31 {strides = array<i32>} : memref<8x128xf32, #tpu.memory_space<vmem>>, vector<8x128xf32>,
      %cst_20 = arith.constant 0.000000e+00 : f32
      %33 = vector.broadcast %cst_20 : f32 to vector<8x128xf32>
      %c0_21 = arith.constant 0 : index
      %c0_22 = arith.constant 0 : index
      %34 = vector.load %arg8[%c0_21, %c0_22] : memref<8x128xf32, #tpu.memory_space<vmem>>, vector<8x128xf32>
      tpu.vector_store %arg8[%c0_21, %c0_22], %33 {strides = array<i32>} : memref<8x128xf32, #tpu.memory_space<vmem>>, vector<8x128xf32>,
    } else {
    }
    %c0 = arith.constant 0 : index
    %c0_1 = arith.constant 0 : index
    %3 = vector.load %arg4[%c0, %c0_1] : memref<16x4xbf16, #tpu.memory_space<vmem>>, vector<16x4xbf16>
    %c0_2 = arith.constant 0 : index
    %c0_3 = arith.constant 0 : index
    %4 = vector.load %arg5[%c0_2, %c0_3] : memref<4x128xbf16, #tpu.memory_space<vmem>>, vector<4x128xbf16>
    %cst = arith.constant dense<0.000000e+00> : vector<16x128xf32>
    %5 = tpu.matmul %3, %4, %cst {dimension_numbers = #tpu.dot_dimension_numbers<[1], [0], [0], [1], [0, 0, 1, 1], [], []>} : vector<16x4xbf16>, vector<4x128xbf16>, vector<16x128xf32> -> vector<16x128xf32>
    %c2_i32 = arith.constant 2 : i32
    %6 = arith.muli %arg0, %c2_i32 : i32
    %7 = arith.addi %6, %arg1 : i32
    %c16_i32 = arith.constant 16 : i32
    %8 = arith.muli %7, %c16_i32 : i32
    %9 = tpu.iota {dimensions = array<i32: 0>} : vector<16x1xi32>
    %10 = vector.broadcast %8 : i32 to vector<16x1xi32>
    %11 = arith.addi %10, %9 : vector<16x1xi32>
    %c48_i32 = arith.constant 48 : i32
    %12 = vector.broadcast %c48_i32 : i32 to vector<16x1xi32>
    %13 = arith.cmpi slt, %11, %12 : vector<16x1xi32>
    %cst_4 = arith.constant 0.000000e+00 : f32
    %14 = vector.shape_cast %13 : vector<16x1xi1> to vector<16x1xi1>
    %15 = vector.broadcast %14 : vector<16x1xi1> to vector<16x128xi1>
    %16 = vector.broadcast %cst_4 : f32 to vector<16x128xf32>
    %17 = arith.select %15, %5, %16 : vector<16x128xi1>, vector<16x128xf32>
    %c0_5 = arith.constant 0 : index
    %c0_6 = arith.constant 0 : index
    %18 = vector.load %arg7[%c0_5, %c0_6] : memref<8x128xf32, #tpu.memory_space<vmem>>, vector<1x128xf32>
    %cst_7 = arith.constant dense<0.000000e+00> : vector<128xf32>
    %19 = vector.multi_reduction <add>, %17, %cst_7 [0] : vector<16x128xf32> to vector<128xf32>
    %20 = vector.shape_cast %19 : vector<128xf32> to vector<1x128xf32>
    %21 = arith.addf %18, %20 : vector<1x128xf32>
    %c0_8 = arith.constant 0 : index
    %c0_9 = arith.constant 0 : index
    %22 = vector.load %arg7[%c0_8, %c0_9] : memref<8x128xf32, #tpu.memory_space<vmem>>, vector<1x128xf32>
    tpu.vector_store %arg7[%c0_8, %c0_9], %21 {strides = array<i32>} : memref<8x128xf32, #tpu.memory_space<vmem>>, vector<1x128xf32>,
    %c0_10 = arith.constant 0 : index
    %c0_11 = arith.constant 0 : index
    %23 = vector.load %arg8[%c0_10, %c0_11] : memref<8x128xf32, #tpu.memory_space<vmem>>, vector<1x128xf32>
    %24 = arith.mulf %17, %17 : vector<16x128xf32>
    %cst_12 = arith.constant dense<0.000000e+00> : vector<128xf32>
    %25 = vector.multi_reduction <add>, %24, %cst_12 [0] : vector<16x128xf32> to vector<128xf32>
    %26 = vector.shape_cast %25 : vector<128xf32> to vector<1x128xf32>
    %27 = arith.addf %23, %26 : vector<1x128xf32>
    %c0_13 = arith.constant 0 : index
    %c0_14 = arith.constant 0 : index
    %28 = vector.load %arg8[%c0_13, %c0_14] : memref<8x128xf32, #tpu.memory_space<vmem>>, vector<1x128xf32>
    tpu.vector_store %arg8[%c0_13, %c0_14], %27 {strides = array<i32>} : memref<8x128xf32, #tpu.memory_space<vmem>>, vector<1x128xf32>,
    %29 = arith.truncf %5 : vector<16x128xf32> to vector<16x128xbf16>
    %c0_15 = arith.constant 0 : index
    %c0_16 = arith.constant 0 : index
    %30 = vector.load %arg6[%c0_15, %c0_16] : memref<16x128xbf16, #tpu.memory_space<vmem>>, vector<16x128xbf16>
    tpu.vector_store %arg6[%c0_15, %c0_16], %29 {strides = array<i32>} : memref<16x128xbf16, #tpu.memory_space<vmem>>, vector<16x128xbf16>,
    return
  }
  func.func @transform_0(%arg0: i32, %arg1: i32) -> (i32, i32) {
    %c0_i32 = arith.constant 0 : i32
    %c0_i32_0 = arith.constant 0 : i32
    %c0_i32_1 = arith.constant 0 : i32
    return %c0_i32, %c0_i32_0 : i32, i32
  }
  func.func @transform_1(%arg0: i32, %arg1: i32) -> (i32, i32) {
    %c0_i32 = arith.constant 0 : i32
    %c0_i32_0 = arith.constant 0 : i32
    %c0_i32_1 = arith.constant 0 : i32
    return %c0_i32, %c0_i32_0 : i32, i32
  }
  func.func @transform_2(%arg0: i32, %arg1: i32) -> (i32, i32) {
    %c2_i32 = arith.constant 2 : i32
    %0 = arith.muli %arg0, %c2_i32 : i32
    %1 = arith.addi %0, %arg1 : i32
    %c0_i32 = arith.constant 0 : i32
    %c0_i32_0 = arith.constant 0 : i32
    return %1, %c0_i32 : i32, i32
  }
  func.func @transform_3(%arg0: i32, %arg1: i32) -> (i32, i32) {
    %c0_i32 = arith.constant 0 : i32
    %c0_i32_0 = arith.constant 0 : i32
    %c0_i32_1 = arith.constant 0 : i32
    return %c0_i32, %c0_i32_0 : i32, i32
  }
  func.func @transform_4(%arg0: i32, %arg1: i32) -> (i32, i32) {
    %c2_i32 = arith.constant 2 : i32
    %0 = arith.muli %arg0, %c2_i32 : i32
    %1 = arith.addi %0, %arg1 : i32
    %c0_i32 = arith.constant 0 : i32
    %c0_i32_0 = arith.constant 0 : i32
    return %1, %c0_i32 : i32, i32
  }
  func.func @transform_5(%arg0: i32, %arg1: i32) -> (i32, i32) {
    %c0_i32 = arith.constant 0 : i32
    %c0_i32_0 = arith.constant 0 : i32
    return %arg0, %c0_i32 : i32, i32
  }
  func.func @transform_6(%arg0: i32, %arg1: i32) -> (i32, i32) {
    %c0_i32 = arith.constant 0 : i32
    %c0_i32_0 = arith.constant 0 : i32
    return %arg0, %c0_i32 : i32, i32
  }
}

module attributes {stable_mosaic.version = 11 : i64} {
  func.func @_norm_act_kernel(%arg0: i32, %arg1: memref<1x128xf32, #tpu.memory_space<vmem>>, %arg2: memref<1x128xf32, #tpu.memory_space<vmem>>, %arg3: memref<64x128xbf16, #tpu.memory_space<vmem>>, %arg4: memref<64x16xf32, #tpu.memory_space<vmem>>) attributes {dimension_semantics = [#tpu.dimension_semantics<parallel>], iteration_bounds = array<i64: 1>, scalar_prefetch = 0 : i64, scratch_operands = 0 : i64, tpu.core_type = #tpu.core_type<tc>, window_params = [{pipeline_mode = #tpu.pipeline_mode<synchronous>, transform_indices = @transform_0, window_bounds = array<i64: 1, 128>}, {pipeline_mode = #tpu.pipeline_mode<synchronous>, transform_indices = @transform_1, window_bounds = array<i64: 1, 128>}, {transform_indices = @transform_2, window_bounds = array<i64: 64, 128>}, {transform_indices = @transform_3, window_bounds = array<i64: 64, 16>}]} {
    %c0 = arith.constant 0 : index
    %c0_0 = arith.constant 0 : index
    %0 = vector.load %arg3[%c0, %c0_0] : memref<64x128xbf16, #tpu.memory_space<vmem>>, vector<64x128xbf16>
    %1 = arith.extf %0 : vector<64x128xbf16> to vector<64x128xf32>
    %c0_1 = arith.constant 0 : index
    %c0_2 = arith.constant 0 : index
    %2 = vector.load %arg1[%c0_1, %c0_2] : memref<1x128xf32, #tpu.memory_space<vmem>>, vector<1x128xf32>
    %3 = vector.broadcast %2 : vector<1x128xf32> to vector<64x128xf32>
    %4 = arith.mulf %1, %3 : vector<64x128xf32>
    %c0_3 = arith.constant 0 : index
    %c0_4 = arith.constant 0 : index
    %5 = vector.load %arg2[%c0_3, %c0_4] : memref<1x128xf32, #tpu.memory_space<vmem>>, vector<1x128xf32>
    %6 = vector.broadcast %5 : vector<1x128xf32> to vector<64x128xf32>
    %7 = arith.addf %4, %6 : vector<64x128xf32>
    %cst = arith.constant 0.000000e+00 : f32
    %8 = vector.broadcast %cst : f32 to vector<64x128xf32>
    %9 = arith.maximumf %7, %8 : vector<64x128xf32>
    %10 = vector.extract_strided_slice %9 {offsets = [0, 0], sizes = [64, 16], strides = [1, 1]} : vector<64x128xf32> to vector<64x16xf32>
    %c0_5 = arith.constant 0 : index
    %c0_6 = arith.constant 0 : index
    %11 = vector.load %arg4[%c0_5, %c0_6] : memref<64x16xf32, #tpu.memory_space<vmem>>, vector<64x16xf32>
    tpu.vector_store %arg4[%c0_5, %c0_6], %10 {strides = array<i32>} : memref<64x16xf32, #tpu.memory_space<vmem>>, vector<64x16xf32>,
    return
  }
  func.func @transform_0(%arg0: i32) -> (i32, i32) {
    %c0_i32 = arith.constant 0 : i32
    %c0_i32_0 = arith.constant 0 : i32
    %c0_i32_1 = arith.constant 0 : i32
    return %c0_i32, %c0_i32_0 : i32, i32
  }
  func.func @transform_1(%arg0: i32) -> (i32, i32) {
    %c0_i32 = arith.constant 0 : i32
    %c0_i32_0 = arith.constant 0 : i32
    %c0_i32_1 = arith.constant 0 : i32
    return %c0_i32, %c0_i32_0 : i32, i32
  }
  func.func @transform_2(%arg0: i32) -> (i32, i32) {
    %c0_i32 = arith.constant 0 : i32
    %c0_i32_0 = arith.constant 0 : i32
    return %arg0, %c0_i32 : i32, i32
  }
  func.func @transform_3(%arg0: i32) -> (i32, i32) {
    %c0_i32 = arith.constant 0 : i32
    %c0_i32_0 = arith.constant 0 : i32
    return %arg0, %c0_i32 : i32, i32
  }
}

module attributes {stable_mosaic.version = 11 : i64} {
  func.func @_matmul_stats_kernel(%arg0: i32, %arg1: i32, %arg2: memref<1x128xf32, #tpu.memory_space<vmem>>, %arg3: memref<1x128xf32, #tpu.memory_space<vmem>>, %arg4: memref<16x128xbf16, #tpu.memory_space<vmem>>, %arg5: memref<128x128xbf16, #tpu.memory_space<vmem>>, %arg6: memref<16x128xbf16, #tpu.memory_space<vmem>>, %arg7: memref<8x128xf32, #tpu.memory_space<vmem>>, %arg8: memref<8x128xf32, #tpu.memory_space<vmem>>) attributes {dimension_semantics = [#tpu.dimension_semantics<parallel>, #tpu.dimension_semantics<arbitrary>], iteration_bounds = array<i64: 2, 2>, scalar_prefetch = 0 : i64, scratch_operands = 0 : i64, tpu.core_type = #tpu.core_type<tc>, window_params = [{pipeline_mode = #tpu.pipeline_mode<synchronous>, transform_indices = @transform_0, window_bounds = array<i64: 1, 128>}, {pipeline_mode = #tpu.pipeline_mode<synchronous>, transform_indices = @transform_1, window_bounds = array<i64: 1, 128>}, {transform_indices = @transform_2, window_bounds = array<i64: 16, 128>}, {pipeline_mode = #tpu.pipeline_mode<synchronous>, transform_indices = @transform_3, window_bounds = array<i64: 128, 128>}, {transform_indices = @transform_4, window_bounds = array<i64: 16, 128>}, {transform_indices = @transform_5, window_bounds = array<i64: 8, 128>}, {transform_indices = @transform_6, window_bounds = array<i64: 8, 128>}]} {
    %c0_i32 = arith.constant 0 : i32
    %0 = arith.cmpi eq, %arg1, %c0_i32 : i32
    %1 = arith.extui %0 : i1 to i32
    %c0_i32_0 = arith.constant 0 : i32
    %2 = arith.cmpi ne, %1, %c0_i32_0 : i32
    scf.if %2 {
      %cst_22 = arith.constant 0.000000e+00 : f32
      %41 = vector.broadcast %cst_22 : f32 to vector<8x128xf32>
      %c0_23 = arith.constant 0 : index
      %c0_24 = arith.constant 0 : index
      %42 = vector.load %arg7[%c0_23, %c0_24] : memref<8x128xf32, #tpu.memory_space<vmem>>, vector<8x128xf32>
      tpu.vector_store %arg7[%c0_23, %c0_24], %41 {strides = array<i32>} : memref<8x128xf32, #tpu.memory_space<vmem>>, vector<8x128xf32>,
      %cst_25 = arith.constant 0.000000e+00 : f32
      %43 = vector.broadcast %cst_25 : f32 to vector<8x128xf32>
      %c0_26 = arith.constant 0 : index
      %c0_27 = arith.constant 0 : index
      %44 = vector.load %arg8[%c0_26, %c0_27] : memref<8x128xf32, #tpu.memory_space<vmem>>, vector<8x128xf32>
      tpu.vector_store %arg8[%c0_26, %c0_27], %43 {strides = array<i32>} : memref<8x128xf32, #tpu.memory_space<vmem>>, vector<8x128xf32>,
    } else {
    }
    %c0 = arith.constant 0 : index
    %c0_1 = arith.constant 0 : index
    %3 = vector.load %arg4[%c0, %c0_1] : memref<16x128xbf16, #tpu.memory_space<vmem>>, vector<16x128xbf16>
    %4 = arith.extf %3 : vector<16x128xbf16> to vector<16x128xf32>
    %c0_2 = arith.constant 0 : index
    %c0_3 = arith.constant 0 : index
    %5 = vector.load %arg2[%c0_2, %c0_3] : memref<1x128xf32, #tpu.memory_space<vmem>>, vector<1x128xf32>
    %6 = vector.broadcast %5 : vector<1x128xf32> to vector<16x128xf32>
    %7 = arith.mulf %4, %6 : vector<16x128xf32>
    %c0_4 = arith.constant 0 : index
    %c0_5 = arith.constant 0 : index
    %8 = vector.load %arg3[%c0_4, %c0_5] : memref<1x128xf32, #tpu.memory_space<vmem>>, vector<1x128xf32>
    %9 = vector.broadcast %8 : vector<1x128xf32> to vector<16x128xf32>
    %10 = arith.addf %7, %9 : vector<16x128xf32>
    %cst = arith.constant 0.000000e+00 : f32
    %11 = vector.broadcast %cst : f32 to vector<16x128xf32>
    %12 = arith.maximumf %10, %11 : vector<16x128xf32>
    %13 = arith.truncf %12 : vector<16x128xf32> to vector<16x128xbf16>
    %c0_6 = arith.constant 0 : index
    %c0_7 = arith.constant 0 : index
    %14 = vector.load %arg5[%c0_6, %c0_7] : memref<128x128xbf16, #tpu.memory_space<vmem>>, vector<128x128xbf16>
    %cst_8 = arith.constant dense<0.000000e+00> : vector<16x128xf32>
    %15 = tpu.matmul %13, %14, %cst_8 {dimension_numbers = #tpu.dot_dimension_numbers<[1], [0], [0], [1], [0, 0, 1, 1], [], []>} : vector<16x128xbf16>, vector<128x128xbf16>, vector<16x128xf32> -> vector<16x128xf32>
    %c2_i32 = arith.constant 2 : i32
    %16 = arith.muli %arg0, %c2_i32 : i32
    %17 = arith.addi %16, %arg1 : i32
    %c16_i32 = arith.constant 16 : i32
    %18 = arith.muli %17, %c16_i32 : i32
    %19 = tpu.iota {dimensions = array<i32: 0>} : vector<16x1xi32>
    %20 = vector.broadcast %18 : i32 to vector<16x1xi32>
    %21 = arith.addi %20, %19 : vector<16x1xi32>
    %c48_i32 = arith.constant 48 : i32
    %22 = vector.broadcast %c48_i32 : i32 to vector<16x1xi32>
    %23 = arith.cmpi slt, %21, %22 : vector<16x1xi32>
    %cst_9 = arith.constant 0.000000e+00 : f32
    %24 = vector.shape_cast %23 : vector<16x1xi1> to vector<16x1xi1>
    %25 = vector.broadcast %24 : vector<16x1xi1> to vector<16x128xi1>
    %26 = vector.broadcast %cst_9 : f32 to vector<16x128xf32>
    %27 = arith.select %25, %15, %26 : vector<16x128xi1>, vector<16x128xf32>
    %c0_10 = arith.constant 0 : index
    %c0_11 = arith.constant 0 : index
    %28 = vector.load %arg7[%c0_10, %c0_11] : memref<8x128xf32, #tpu.memory_space<vmem>>, vector<1x128xf32>
    %cst_12 = arith.constant dense<0.000000e+00> : vector<128xf32>
    %29 = vector.multi_reduction <add>, %27, %cst_12 [0] : vector<16x128xf32> to vector<128xf32>
    %30 = vector.shape_cast %29 : vector<128xf32> to vector<1x128xf32>
    %31 = arith.addf %28, %30 : vector<1x128xf32>
    %c0_13 = arith.constant 0 : index
    %c0_14 = arith.constant 0 : index
    %32 = vector.load %arg7[%c0_13, %c0_14] : memref<8x128xf32, #tpu.memory_space<vmem>>, vector<1x128xf32>
    tpu.vector_store %arg7[%c0_13, %c0_14], %31 {strides = array<i32>} : memref<8x128xf32, #tpu.memory_space<vmem>>, vector<1x128xf32>,
    %c0_15 = arith.constant 0 : index
    %c0_16 = arith.constant 0 : index
    %33 = vector.load %arg8[%c0_15, %c0_16] : memref<8x128xf32, #tpu.memory_space<vmem>>, vector<1x128xf32>
    %34 = arith.mulf %27, %27 : vector<16x128xf32>
    %cst_17 = arith.constant dense<0.000000e+00> : vector<128xf32>
    %35 = vector.multi_reduction <add>, %34, %cst_17 [0] : vector<16x128xf32> to vector<128xf32>
    %36 = vector.shape_cast %35 : vector<128xf32> to vector<1x128xf32>
    %37 = arith.addf %33, %36 : vector<1x128xf32>
    %c0_18 = arith.constant 0 : index
    %c0_19 = arith.constant 0 : index
    %38 = vector.load %arg8[%c0_18, %c0_19] : memref<8x128xf32, #tpu.memory_space<vmem>>, vector<1x128xf32>
    tpu.vector_store %arg8[%c0_18, %c0_19], %37 {strides = array<i32>} : memref<8x128xf32, #tpu.memory_space<vmem>>, vector<1x128xf32>,
    %39 = arith.truncf %15 : vector<16x128xf32> to vector<16x128xbf16>
    %c0_20 = arith.constant 0 : index
    %c0_21 = arith.constant 0 : index
    %40 = vector.load %arg6[%c0_20, %c0_21] : memref<16x128xbf16, #tpu.memory_space<vmem>>, vector<16x128xbf16>
    tpu.vector_store %arg6[%c0_20, %c0_21], %39 {strides = array<i32>} : memref<16x128xbf16, #tpu.memory_space<vmem>>, vector<16x128xbf16>,
    return
  }
  func.func @transform_0(%arg0: i32, %arg1: i32) -> (i32, i32) {
    %c0_i32 = arith.constant 0 : i32
    %c0_i32_0 = arith.constant 0 : i32
    %c0_i32_1 = arith.constant 0 : i32
    return %c0_i32, %c0_i32_0 : i32, i32
  }
  func.func @transform_1(%arg0: i32, %arg1: i32) -> (i32, i32) {
    %c0_i32 = arith.constant 0 : i32
    %c0_i32_0 = arith.constant 0 : i32
    %c0_i32_1 = arith.constant 0 : i32
    return %c0_i32, %c0_i32_0 : i32, i32
  }
  func.func @transform_2(%arg0: i32, %arg1: i32) -> (i32, i32) {
    %c2_i32 = arith.constant 2 : i32
    %0 = arith.muli %arg0, %c2_i32 : i32
    %1 = arith.addi %0, %arg1 : i32
    %c0_i32 = arith.constant 0 : i32
    %c0_i32_0 = arith.constant 0 : i32
    return %1, %c0_i32 : i32, i32
  }
  func.func @transform_3(%arg0: i32, %arg1: i32) -> (i32, i32) {
    %c0_i32 = arith.constant 0 : i32
    %c0_i32_0 = arith.constant 0 : i32
    %c0_i32_1 = arith.constant 0 : i32
    return %c0_i32, %c0_i32_0 : i32, i32
  }
  func.func @transform_4(%arg0: i32, %arg1: i32) -> (i32, i32) {
    %c2_i32 = arith.constant 2 : i32
    %0 = arith.muli %arg0, %c2_i32 : i32
    %1 = arith.addi %0, %arg1 : i32
    %c0_i32 = arith.constant 0 : i32
    %c0_i32_0 = arith.constant 0 : i32
    return %1, %c0_i32 : i32, i32
  }
  func.func @transform_5(%arg0: i32, %arg1: i32) -> (i32, i32) {
    %c0_i32 = arith.constant 0 : i32
    %c0_i32_0 = arith.constant 0 : i32
    return %arg0, %c0_i32 : i32, i32
  }
  func.func @transform_6(%arg0: i32, %arg1: i32) -> (i32, i32) {
    %c0_i32 = arith.constant 0 : i32
    %c0_i32_0 = arith.constant 0 : i32
    return %arg0, %c0_i32 : i32, i32
  }
}

</mosaic_0001>

<bundles_post_ra>
// kernel: forward.3
= control target key start
LH: loop header
LB: loop body
LE: loop exit
PB: predicated region body
PF: predicated region fallthrough
CT: control target
= control target key end

     0   :  { %s724_s21 = smov 0   ;;  %s726_s0 = smov 0   ;;  %s805_s0 = inlined_call_operand.vmem [shape: f32[1,4], index: 0, kind: input, shape index: {}]   ;;  %s806_s1 = inlined_call_operand.vmem [shape: f32[1,4], index: 1, kind: input, shape index: {}]   ;;  %s807_s2 = inlined_call_operand.vmem [shape: bf16[64,4], index: 2, kind: input, shape index: {}]   ;;  %s808_s3 = inlined_call_operand.vmem [shape: bf16[4,128], index: 3, kind: input, shape index: {}]   ;;  %s809_s4 = inlined_call_operand.vmem [shape: bf16[64,128], index: 4, kind: output, shape index: {0}]   ;;  %s810_s5 = inlined_call_operand.vmem [shape: f32[16,128], index: 5, kind: output, shape index: {1}]   ;;  %s811_s6 = inlined_call_operand.vmem [shape: f32[16,128], index: 6, kind: output, shape index: {2}]  }
   0x1   :  { %s728_s1 = smov 0   ;;  %s730_s22 = smov 0  }
   0x2   :  { %s732_s23 = smov 0  }
   0x3 LB: > { %s26_s24 = sadd.s32 1, %s676_s1  ;;  %s29_s25 = sadd.s32 1, %s680_s22  ;;  %s684_s23 = sphi %s732_s23, %s17_s23   ;;  %s680_s22 = sphi %s730_s22, %s815_s22   ;;  %s676_s1 = sphi %s728_s1, %s814_s1   ;;  %s672_s0 = sphi %s726_s0, %s813_s0   ;;  %s668_s21 = sphi %s724_s21, %s812_s21  }
   0x4   : > { %p27_p0 = scmp.ge.s32.totalorder %s26_s24, 2  ;;  %p569_p1 = scmp.ge.s32.totalorder %s684_s23, 1 }
   0x5   : > { %p242_p2 = scmp.lt.s32.totalorder %s684_s23, 5 }
   0x6   : > { %s817_s24 = smov (%p27_p0, %s26_s24), 0  ;;  %s819_s25 = smov (!%p27_p0, %s29_s25), %s680_s22 }
   0x7   : > { %p243_p3 = pnand %p569_p1, %p242_p2  ;;  %p31_p4 = scmp.ge.s32.totalorder %s819_s25, 2 }
   0x8   : > { %s570_s26 = sshll.u32 (!%p243_p3), %s672_s0, 1  ;;  %p304_p5 = scmp.lt.s32.totalorder (!%p243_p3), %s672_s0, 1 }
   0x9   : > { %s821_s25 = smov (%p31_p4, %s819_s25), 0  ;;  %246 = sbr.rel (%p243_p3) target bundleno = 266 (0x10a), region = 36 }
   0xa   : > { %s757_s27 = sadd.s32 (!%p243_p3), %s668_s21, %s570_s26  ;;  %p578_p7 = scmp.ne.s32.totalorder (!%p243_p3), %s668_s21, 0 }
   0xb   : > { %s571_s28 = sshll.u32 (!%p243_p3), %s757_s27, 1 }
   0xc   : > { %p287_p6 = scmp.lt.s32.totalorder (!%p243_p3), %s571_s28, 7 }
  0x10   : > { %s823_s0 = smov (!%p304_p5, %s672_s0), 1  ;;  %s825_s28 = smov (!%p287_p6, %s571_s28), 7 }
  0x11   : > { %s576_s29 = sshll.u32 %s823_s0, 3  ;;  %s572_s30 = sshll.u32 %s825_s28, 2  ;;  %v686_v0 = vmov (!%p578_p7), 0.0  }
  0x12   : > { %s763_s9 = scalar_lea.vmem %s810_s5, %s576_s29  ;;  %s290_s12 = scalar_lea.vmem %s807_s2, %s572_s30 }
  0x13   : > { %s771_s15 = scalar_lea.vmem %s809_s4, %s572_s30  ;;  %s776_s18 = scalar_lea.vmem %s811_s6, %s576_s29  ;;  %317 = vst [vmem:[%s763_s9] sm:$0xff] (!%p578_p7), %v686_v0 }
  0x14   : > { %316 = sbr.rel (%p578_p7) target bundleno = 27 (0x1b), region = 40  ;;  %318 = vst [vmem:[%s776_s18] sm:$0xff] (!%p578_p7), %v686_v0 }
  0x1b PF: > { %v321_v1 = vld [vmem:[%s808_s3] sm:$0x3]  ;;  %vm331_vm0 = vcmask 1041408   ;;  %v687_v2 = vmov 0.0   ;;  %vm688_vm1 = vmmov 0   ;;  %vm327_vm2 = vcmask 31744  }
  0x1c   : > { %596 = vmatprep.subr.bf16.mxu0 %v687_v2  ;;  %v333_v3 = vsel %vm331_vm0, %v321_v1, 0  ;;  %598 = vmatprep.mubr.msk.bf16.mxu0 %vm688_vm1, %v687_v2  ;;  %v645_v4 = vld [vmem:[%s290_s12] sm:$0xff]   ;;  %v379_v5 = vlaneseq  ;;  %s582_s21 = sshll.u32 %s757_s27, 4 }
  0x1d   : > { %597 = vmatpush3.bf16.msra.mxu0 %v333_v3  ;;  %v382_v7 = vstv %s582_s21  ;;  %v393_v31 = vld [vmem:[%s763_s9] sm:$0x1] }
  0x1e   : > { %v380_v6 = vshrl.u32 %v379_v5, 7  ;;  %v403_v34 = vld [vmem:[%s776_s18] sm:$0x1] }
  0x20   : > { %599 = vmatmul.mubr.msk.bf16.vlgmr.msra.gmra.mrb[0].mxu0 %vm327_vm2, %v645_v4  ;;  %v381_v8 = vadd.s32 8, %v380_v6  ;;  %v383_v9 = vadd.s32 %v382_v7, %v380_v6 }
  0x22   : > { %v384_v10 = vadd.s32 %v382_v7, %v381_v8  ;;  %vm385_vm3 = vcmp.lt.s32.totalorder %v383_v9, 48 }
  0x24   : > { %vm386_vm4 = vcmp.lt.s32.totalorder %v384_v10, 48 }
  0xf3   : > { %v369_v11 = vpop.f32.mrb[0].mxu0 }
  0xf4   : > { %v391_v12 = vsel %vm385_vm3, %v369_v11, 0.0  ;;  %v600_v13 = vpop.f32.mrb[1].mxu0 }
  0xf5   : > { %v372_v14 = vpop.f32.mrb[2].mxu0  ;;  %v404_v18 = vmul.f32 %v391_v12, %v391_v12 }
  0xf6   : > { %v392_v15 = vsel %vm386_vm4, %v372_v14, 0.0  ;;  %v592_v16 = vpack.c.bf16 %v372_v14, %v369_v11  ;;  %v601_v17 = vpop.f32.mrb[3].mxu0 }
  0xf7   : > { %v394_v19 = vadd.f32 %v392_v15, %v391_v12  ;;  %v405_v20 = vmul.f32 %v392_v15, %v392_v15 }
  0xf8   : > { %593 = vst [vmem:[%s771_s15] sm:$0xff] %v592_v16  }
  0xf9   : > { %v395_v21 = vrot.slane %v394_v19, 4  ;;  %v406_v22 = vadd.f32 %v405_v20, %v404_v18 }
  0xfb   : > { %v396_v23 = vadd.f32 %v395_v21, %v394_v19  ;;  %v407_v24 = vrot.slane %v406_v22, 4 }
  0xfd   : > { %v397_v25 = vrot.slane %v396_v23, 2  ;;  %v408_v26 = vadd.f32 %v407_v24, %v406_v22 }
  0xff   : > { %v398_v27 = vadd.f32 %v397_v25, %v396_v23  ;;  %v409_v28 = vrot.slane %v408_v26, 2 }
 0x101   : > { %v399_v29 = vrot.slane %v398_v27, 1  ;;  %v410_v30 = vadd.f32 %v409_v28, %v408_v26 }
 0x103   : > { %v400_v32 = vadd.f32 %v399_v29, %v398_v27  ;;  %v411_v33 = vrot.slane %v410_v30, 1 }
 0x105   : > { %v401_v35 = vadd.f32 %v400_v32, %v393_v31  ;;  %v412_v36 = vadd.f32 %v411_v33, %v410_v30 }
 0x107   : > { %402 = vst [vmem:[%s763_s9] sm:$0x1] %v401_v35  ;;  %v413_v37 = vadd.f32 %v412_v36, %v403_v34 }
 0x109   : > { %414 = vst [vmem:[%s776_s18] sm:$0x1] %v413_v37 }
 0x10a PF: > { %s17_s23 = sadd.s32 1, %s684_s23   ;;  %s812_s21 = smov %s676_s1 }
 0x10b   : > { %p14_p8 = scmp.ge.s32.totalorder %s17_s23, 6   ;;  %s813_s0 = smov %s680_s22 }
 0x10c   : > { %s814_s1 = smov %s817_s24  ;;  %s815_s22 = smov %s821_s25 }
 0x10d   :  { %16 = sbr.rel (!%p14_p8) target bundleno = 3 (0x3), region = 94 }

// kernel: forward.5
= control target key start
LH: loop header
LB: loop body
LE: loop exit
PB: predicated region body
PF: predicated region fallthrough
CT: control target
= control target key end

     0   :  { %vm68_vm0 = vcmask 130048   ;;  %s172_s0 = inlined_call_operand.vmem [shape: f32[1,128], index: 0, kind: input, shape index: {}]   ;;  %s173_s1 = inlined_call_operand.vmem [shape: f32[1,128], index: 1, kind: input, shape index: {}]   ;;  %s174_s2 = inlined_call_operand.vmem [shape: bf16[64,128], index: 2, kind: input, shape index: {}]   ;;  %s175_s3 = inlined_call_operand.vmem [shape: f32[64,16], index: 3, kind: output, shape index: {}]  }
   0x1   :  { %v84_v0 = vld [vmem:[%s174_s2] sm:$0xff]   ;;  %v99_v4 = vld [vmem:[%s174_s2 + $0x8] sm:$0xff]   ;;  %v100_v5 = vld [vmem:[%s174_s2 + $0x10] sm:$0xff]  }
   0x2   :  { %v81_v1 = vld [vmem:[%s172_s0] ss:$0 sm:$0xff]  ;;  %v85_v2 = vunpack.c.l.bf16 %v84_v0  ;;  %v86_v3 = vunpack.c.h.bf16 %v84_v0  ;;  %v101_v6 = vld [vmem:[%s174_s2 + $0x18] sm:$0xff]   ;;  %v89_v8 = vunpack.c.l.bf16 %v99_v4  ;;  %v90_v9 = vunpack.c.h.bf16 %v99_v4 }
   0x3   :  { %v82_v7 = vld [vmem:[%s173_s1] ss:$0 sm:$0xff]  ;;  %v93_v10 = vunpack.c.l.bf16 %v100_v5  ;;  %v94_v11 = vunpack.c.h.bf16 %v100_v5  ;;  %v97_v14 = vunpack.c.l.bf16 %v101_v6  ;;  %v98_v15 = vunpack.c.h.bf16 %v101_v6 }
   0x4   :  { %v37_v12 = vmul.f32 %v85_v2, %v81_v1  ;;  %v38_v13 = vmul.f32 %v86_v3, %v81_v1  ;;  %v39_v16 = vmul.f32 %v89_v8, %v81_v1  ;;  %v40_v17 = vmul.f32 %v90_v9, %v81_v1 }
   0x5   :  { %v41_v18 = vmul.f32 %v93_v10, %v81_v1  ;;  %v42_v19 = vmul.f32 %v94_v11, %v81_v1  ;;  %v43_v22 = vmul.f32 %v97_v14, %v81_v1  ;;  %v44_v23 = vmul.f32 %v98_v15, %v81_v1 }
   0x6   :  { %v52_v20 = vadd.f32 %v82_v7, %v37_v12  ;;  %v53_v21 = vadd.f32 %v82_v7, %v38_v13  ;;  %v54_v24 = vadd.f32 %v82_v7, %v39_v16  ;;  %v55_v25 = vadd.f32 %v82_v7, %v40_v17 }
   0x7   :  { %v56_v26 = vadd.f32 %v82_v7, %v41_v18  ;;  %v57_v27 = vadd.f32 %v82_v7, %v42_v19  ;;  %v58_v30 = vadd.f32 %v82_v7, %v43_v22  ;;  %v59_v31 = vadd.f32 %v82_v7, %v44_v23 }
   0x8   :  { %v60_v28 = vmax.f32 %v52_v20, 0.0  ;;  %v61_v29 = vmax.f32 %v53_v21, 0.0  ;;  %v62_v32 = vmax.f32 %v54_v24, 0.0  ;;  %v63_v33 = vmax.f32 %v55_v25, 0.0 }
   0x9   :  { %v64_v34 = vmax.f32 %v56_v26, 0.0  ;;  %v65_v35 = vmax.f32 %v57_v27, 0.0  ;;  %v66_v36 = vmax.f32 %v58_v30, 0.0  ;;  %v67_v37 = vmax.f32 %v59_v31, 0.0 }
   0xa   :  { %69 = vst.msk [vmem:[%s175_s3] sm:$0xff] %vm68_vm0, %v60_v28  ;;  %70 = vst.msk [vmem:[%s175_s3 + $0x8] sm:$0xff] %vm68_vm0, %v61_v29 }
   0xb   :  { %71 = vst.msk [vmem:[%s175_s3 + $0x10] sm:$0xff] %vm68_vm0, %v62_v32  ;;  %72 = vst.msk [vmem:[%s175_s3 + $0x18] sm:$0xff] %vm68_vm0, %v63_v33 }
   0xc   :  { %73 = vst.msk [vmem:[%s175_s3 + $0x20] sm:$0xff] %vm68_vm0, %v64_v34  ;;  %74 = vst.msk [vmem:[%s175_s3 + $0x28] sm:$0xff] %vm68_vm0, %v65_v35 }
   0xd   :  { %75 = vst.msk [vmem:[%s175_s3 + $0x30] sm:$0xff] %vm68_vm0, %v66_v36  ;;  %76 = vst.msk [vmem:[%s175_s3 + $0x38] sm:$0xff] %vm68_vm0, %v67_v37 }

// kernel: forward.4
= control target key start
LH: loop header
LB: loop body
LE: loop exit
PB: predicated region body
PF: predicated region fallthrough
CT: control target
= control target key end

     0   :  { %s837_s21 = smov 0   ;;  %s839_s22 = smov 0   ;;  %s945_s0 = inlined_call_operand.vmem [shape: f32[1,128], index: 0, kind: input, shape index: {}]   ;;  %s946_s1 = inlined_call_operand.vmem [shape: f32[1,128], index: 1, kind: input, shape index: {}]   ;;  %s947_s2 = inlined_call_operand.vmem [shape: bf16[64,128], index: 2, kind: input, shape index: {}]   ;;  %s948_s3 = inlined_call_operand.vmem [shape: bf16[128,128], index: 3, kind: input, shape index: {}]   ;;  %s949_s4 = inlined_call_operand.vmem [shape: bf16[64,128], index: 4, kind: output, shape index: {0}]   ;;  %s950_s5 = inlined_call_operand.vmem [shape: f32[16,128], index: 5, kind: output, shape index: {1}]   ;;  %s951_s6 = inlined_call_operand.vmem [shape: f32[16,128], index: 6, kind: output, shape index: {2}]  }
   0x1   :  { %s841_s23 = smov 0   ;;  %s843_s24 = smov 0  }
   0x2   :  { %s845_s25 = smov 0  }
   0x3 LB: > { %s26_s26 = sadd.s32 1, %s789_s23  ;;  %s29_s27 = sadd.s32 1, %s793_s24  ;;  %s797_s25 = sphi %s845_s25, %s17_s25   ;;  %s793_s24 = sphi %s843_s24, %s955_s24   ;;  %s789_s23 = sphi %s841_s23, %s954_s23   ;;  %s785_s22 = sphi %s839_s22, %s953_s22   ;;  %s781_s21 = sphi %s837_s21, %s952_s21  }
   0x4   : > { %p27_p0 = scmp.ge.s32.totalorder %s26_s26, 2  ;;  %p642_p1 = scmp.ge.s32.totalorder %s797_s25, 1 }
   0x5   : > { %p242_p2 = scmp.lt.s32.totalorder %s797_s25, 5 }
   0x6   : > { %s957_s26 = smov (%p27_p0, %s26_s26), 0  ;;  %s959_s27 = smov (!%p27_p0, %s29_s27), %s793_s24 }
   0x7   : > { %p243_p3 = pnand %p642_p1, %p242_p2  ;;  %p31_p4 = scmp.ge.s32.totalorder %s959_s27, 2 }
   0x8   : > { %s643_s28 = sshll.u32 (!%p243_p3), %s785_s22, 1  ;;  %p304_p5 = scmp.lt.s32.totalorder (!%p243_p3), %s785_s22, 1 }
   0x9   : > { %s961_s27 = smov (%p31_p4, %s959_s27), 0  ;;  %246 = sbr.rel (%p243_p3) target bundleno = 294 (0x126), region = 36 }
   0xa   : > { %s870_s29 = sadd.s32 (!%p243_p3), %s781_s21, %s643_s28  ;;  %p651_p7 = scmp.ne.s32.totalorder (!%p243_p3), %s781_s21, 0 }
   0xb   : > { %s644_s30 = sshll.u32 (!%p243_p3), %s870_s29, 1 }
   0xc   : > { %p287_p6 = scmp.lt.s32.totalorder (!%p243_p3), %s644_s30, 7 }
  0x10   : > { %s963_s22 = smov (!%p304_p5, %s785_s22), 1  ;;  %s965_s30 = smov (!%p287_p6, %s644_s30), 7 }
  0x11   : > { %s649_s7 = sshll.u32 %s963_s22, 3  ;;  %s645_s8 = sshll.u32 %s965_s30, 2  ;;  %v799_v0 = vmov (!%p651_p7), 0.0  }
  0x12   : > { %s876_s11 = scalar_lea.vmem %s950_s5, %s649_s7  ;;  %s290_s14 = scalar_lea.vmem %s947_s2, %s645_s8 }
  0x13   : > { %s884_s17 = scalar_lea.vmem %s949_s4, %s645_s8  ;;  %s889_s20 = scalar_lea.vmem %s951_s6, %s649_s7  ;;  %317 = vst [vmem:[%s876_s11] sm:$0xff] (!%p651_p7), %v799_v0 }
  0x14   : > { %316 = sbr.rel (%p651_p7) target bundleno = 27 (0x1b), region = 40  ;;  %318 = vst [vmem:[%s889_s20] sm:$0xff] (!%p651_p7), %v799_v0 }
  0x1b PF: > { %v751_v1 = vld [vmem:[%s948_s3] sm:$0xff]   ;;  %v800_v2 = vmov 0.0   ;;  %v752_v3 = vld [vmem:[%s948_s3 + $0x8] sm:$0xff]   ;;  %vm801_vm0 = vmmov 0   ;;  %v753_v4 = vld [vmem:[%s948_s3 + $0x10] sm:$0xff]   ;;  %v452_v22 = vlaneseq  ;;  %s663_s7 = sshll.u32 %s870_s29, 4 }
  0x1c   : > { %688 = vmatprep.subr.bf16.mxu0 %v800_v2  ;;  %704 = vmatprep.mubr.msk.bf16.mxu0 %vm801_vm0, %v800_v2  ;;  %v754_v5 = vld [vmem:[%s948_s3 + $0x18] sm:$0xff]   ;;  %v671_v6 = vld [vmem:[%s290_s14] sm:$0xff]   ;;  %v756_v13 = vld [vmem:[%s948_s3 + $0x28] sm:$0xff]   ;;  %v455_v24 = vstv %s663_s7 }
  0x1d   : > { %689 = vmatpush3.bf16.msra.mxu0 %v751_v1  ;;  %v672_v7 = vunpack.c.l.bf16 %v671_v6  ;;  %v673_v8 = vunpack.c.h.bf16 %v671_v6  ;;  %v755_v9 = vld [vmem:[%s948_s3 + $0x20] sm:$0xff]   ;;  %v757_v17 = vld [vmem:[%s948_s3 + $0x30] sm:$0xff]   ;;  %v758_v20 = vld [vmem:[%s948_s3 + $0x38] sm:$0xff]   ;;  %v453_v23 = vshrl.u32 %v452_v22, 7 }
  0x1e   : > { %690 = vmatprep.subr.bf16.mxu0 %v800_v2  ;;  %v652_v10 = vld [vmem:[%s945_s0] ss:$0 sm:$0xff] }
  0x1f   : > { %v330_v11 = vmul.f32 %v672_v7, %v652_v10  ;;  %v331_v12 = vmul.f32 %v673_v8, %v652_v10  ;;  %v653_v14 = vld [vmem:[%s946_s1] ss:$0 sm:$0xff]  ;;  %v454_v25 = vadd.s32 8, %v453_v23  ;;  %v456_v26 = vadd.s32 %v455_v24, %v453_v23 }
  0x20   : > { %v466_v48 = vld [vmem:[%s876_s11] sm:$0x1] }
  0x21   : > { %691 = vmatpush3.bf16.msra.mxu0 %v752_v3  ;;  %v339_v15 = vadd.f32 %v653_v14, %v330_v11  ;;  %v340_v16 = vadd.f32 %v653_v14, %v331_v12  ;;  %v457_v27 = vadd.s32 %v455_v24, %v454_v25  ;;  %vm458_vm1 = vcmp.lt.s32.totalorder %v456_v26, 48  ;;  %v476_v51 = vld [vmem:[%s889_s20] sm:$0x1] }
  0x22   : > { %692 = vmatprep.subr.bf16.mxu0 %v800_v2 }
  0x23   : > { %v341_v18 = vmax.f32 %v339_v15, 0.0  ;;  %v342_v19 = vmax.f32 %v340_v16, 0.0  ;;  %vm459_vm2 = vcmp.lt.s32.totalorder %v457_v27, 48 }
  0x25   : > { %693 = vmatpush3.bf16.msra.mxu0 %v753_v4  ;;  %v343_v21 = vpack.c.bf16 %v342_v19, %v341_v18 }
  0x26   : > { %694 = vmatprep.subr.bf16.mxu0 %v800_v2 }
  0x29   : > { %695 = vmatpush3.bf16.msra.mxu0 %v754_v5 }
  0x2a   : > { %696 = vmatprep.subr.bf16.mxu0 %v800_v2 }
  0x2d   : > { %697 = vmatpush3.bf16.msra.mxu0 %v755_v9 }
  0x2e   : > { %698 = vmatprep.subr.bf16.mxu0 %v800_v2 }
  0x31   : > { %699 = vmatpush3.bf16.msra.mxu0 %v756_v13 }
  0x32   : > { %700 = vmatprep.subr.bf16.mxu0 %v800_v2 }
  0x35   : > { %701 = vmatpush3.bf16.msra.mxu0 %v757_v17 }
  0x36   : > { %702 = vmatprep.subr.bf16.mxu0 %v800_v2 }
  0x39   : > { %703 = vmatpush3.bf16.msra.mxu0 %v758_v20 }
  0x3c   : > { %705 = vmatmul.mubr.bf16.vlgmr.msra.gmra.mrb[0].mxu0 %v343_v21 }
 0x10f   : > { %v442_v28 = vpop.f32.mrb[0].mxu0 }
 0x110   : > { %v464_v29 = vsel %vm458_vm1, %v442_v28, 0.0  ;;  %v706_v30 = vpop.f32.mrb[1].mxu0 }
 0x111   : > { %v445_v31 = vpop.f32.mrb[2].mxu0  ;;  %v477_v35 = vmul.f32 %v464_v29, %v464_v29 }
 0x112   : > { %v465_v32 = vsel %vm459_vm2, %v445_v31, 0.0  ;;  %v677_v33 = vpack.c.bf16 %v445_v31, %v442_v28  ;;  %v707_v34 = vpop.f32.mrb[3].mxu0 }
 0x113   : > { %v467_v36 = vadd.f32 %v465_v32, %v464_v29  ;;  %v478_v37 = vmul.f32 %v465_v32, %v465_v32 }
 0x114   : > { %678 = vst [vmem:[%s884_s17] sm:$0xff] %v677_v33  }
 0x115   : > { %v468_v38 = vrot.slane %v467_v36, 4  ;;  %v479_v39 = vadd.f32 %v478_v37, %v477_v35 }
 0x117   : > { %v469_v40 = vadd.f32 %v468_v38, %v467_v36  ;;  %v480_v41 = vrot.slane %v479_v39, 4 }
 0x119   : > { %v470_v42 = vrot.slane %v469_v40, 2  ;;  %v481_v43 = vadd.f32 %v480_v41, %v479_v39 }
 0x11b   : > { %v471_v44 = vadd.f32 %v470_v42, %v469_v40  ;;  %v482_v45 = vrot.slane %v481_v43, 2 }
 0x11d   : > { %v472_v46 = vrot.slane %v471_v44, 1  ;;  %v483_v47 = vadd.f32 %v482_v45, %v481_v43 }
 0x11f   : > { %v473_v49 = vadd.f32 %v472_v46, %v471_v44  ;;  %v484_v50 = vrot.slane %v483_v47, 1 }
 0x121   : > { %v474_v52 = vadd.f32 %v473_v49, %v466_v48  ;;  %v485_v53 = vadd.f32 %v484_v50, %v483_v47 }
 0x123   : > { %475 = vst [vmem:[%s876_s11] sm:$0x1] %v474_v52  ;;  %v486_v54 = vadd.f32 %v485_v53, %v476_v51 }
 0x125   : > { %487 = vst [vmem:[%s889_s20] sm:$0x1] %v486_v54 }
 0x126 PF: > { %s17_s25 = sadd.s32 1, %s797_s25   ;;  %s952_s21 = smov %s789_s23 }
 0x127   : > { %p14_p8 = scmp.ge.s32.totalorder %s17_s25, 6   ;;  %s953_s22 = smov %s793_s24 }
 0x128   : > { %s954_s23 = smov %s957_s26  ;;  %s955_s24 = smov %s961_s27 }
 0x129   :  { %16 = sbr.rel (!%p14_p8) target bundleno = 3 (0x3), region = 94 }

</bundles_post_ra>
